<compile_context>
chip_gen: v6e
topology: v6e:2x2x1
jax: 0.10.0
libtpu: 0.0.40
codegen_flags: <defaults>
</compile_context>

<pallas_src>
import jax
import jax.numpy as jnp
from jax.experimental import pallas as pl
from jax.experimental.pallas import tpu as pltpu

EPS = 1e-5
NEG_SLOPE = 0.2
LANE = 128
SUBLANE = 8


def _round_up(x, m):
    return (x + m - 1) // m * m


# ---------------- pass 1: conv matmul tile + per-tile partial BN sums ----------------

def _conv_stats_kernel(p_ref, w_ref, conv_ref, stats_ref):
    # p_ref:    (tm, Kp)      im2col patch tile (f32 or bf16)
    # w_ref:    (Kp, Coutp)   reshaped conv weight, resident across the grid
    # conv_ref: (tm, Coutp)   f32 conv output tile (HBM temp, re-read by pass 2)
    # stats_ref:(2, Coutp)    per-tile partial [sum; sum_of_squares] over rows
    conv = jnp.dot(p_ref[...], w_ref[...], preferred_element_type=jnp.float32)
    conv_ref[...] = conv
    # Zero-padded patch rows / weight columns give exactly-zero conv entries
    # (no bias added), so they contribute nothing to the partial sums; the
    # wrapper divides by the true element count M.
    stats_ref[0:1, :] = jnp.sum(conv, axis=0, keepdims=True)
    stats_ref[1:2, :] = jnp.sum(conv * conv, axis=0, keepdims=True)


# ---------------- pass 2: fused BN scale/shift + LeakyReLU ----------------------------

def _make_bn_act_kernel(act: str):
    assert act in ("relu", "none")

    def kernel(scale_ref, shift_ref, conv_ref, o_ref):
        y = conv_ref[...] * scale_ref[...] + shift_ref[...]      # one FMA pass
        if act == "relu":
            y = jnp.maximum(y, NEG_SLOPE * y)                    # LeakyReLU(0.2)
        o_ref[...] = y

    return kernel


def down_block_forward(x, weight, bias, gamma, beta, *, stride=2, act="relu",
                       tm=512, matmul_dtype=jnp.float32, out_layout="NCHW"):
    """x: (N, Cin, H, W) f32.  weight: (Cout, Cin, KH, KW).  bias/gamma/beta: (Cout,)."""
    # Conv bias cancels exactly under BN mean subtraction -> dead work, drop it.
    del bias
    N, C, H, W = x.shape
    Cout, Cin, KH, KW = weight.shape
    assert C == Cin
    OH = (H - KH) // stride + 1
    OW = (W - KW) // stride + 1

    # --- glue: im2col patch extraction (pure data movement, no FLOPs) ---
    cols = []
    for i in range(KH):
        for j in range(KW):
            cols.append(x[:, :, i:i + stride * OH:stride, j:j + stride * OW:stride])
    # flatten order (C, KH, KW) matches PyTorch weight row-major flatten
    patches = jnp.stack(cols, axis=2).reshape(N, C * KH * KW, OH, OW)
    patches = jnp.transpose(patches, (0, 2, 3, 1)).reshape(N * OH * OW, C * KH * KW)
    w2 = weight.reshape(Cout, Cin * KH * KW).T                       # (K, Cout)

    M, K = patches.shape

    # --- pad to MXU / vreg friendly shapes: lanes -> x128, M-tile -> x8 ---
    Kp = _round_up(K, LANE)
    Coutp = _round_up(Cout, LANE)
    tm = max(SUBLANE, min(int(tm), _round_up(M, SUBLANE)))
    tm = _round_up(tm, SUBLANE)
    Mp = _round_up(M, tm)
    n_tiles = Mp // tm

    patches_p = jnp.pad(patches.astype(matmul_dtype), ((0, Mp - M), (0, Kp - K)))
    w2_p = jnp.pad(w2.astype(matmul_dtype), ((0, Kp - K), (0, Coutp - Cout)))

    itemsize = jnp.dtype(matmul_dtype).itemsize
    cost = pl.CostEstimate(
        flops=2 * Mp * Kp * Coutp,
        transcendentals=0,
        bytes_accessed=(Mp * Kp + Kp * Coutp) * itemsize
        + Mp * Coutp * 4 + n_tiles * 2 * Coutp * 4,
    )

    conv2d, part = pl.pallas_call(
        _conv_stats_kernel,
        out_shape=(jax.ShapeDtypeStruct((Mp, Coutp), jnp.float32),
                   jax.ShapeDtypeStruct((n_tiles, 2, Coutp), jnp.float32)),
        grid_spec=pltpu.PrefetchScalarGridSpec(
            num_scalar_prefetch=0,
            grid=(n_tiles,),
            in_specs=[pl.BlockSpec((tm, Kp), lambda m: (m, 0)),
                      pl.BlockSpec((Kp, Coutp), lambda m: (0, 0))],
            out_specs=(pl.BlockSpec((tm, Coutp), lambda m: (m, 0)),
                       pl.BlockSpec((None, 2, Coutp), lambda m: (m, 0, 0))),
        ),
        compiler_params=pltpu.CompilerParams(
            dimension_semantics=("parallel",),          # M tiles independent
            vmem_limit_bytes=32 * 1024 * 1024,          # fits v5e/v6e/v7x scoped VMEM
        ),
        cost_estimate=cost,
    )(patches_p, w2_p)

    # --- tiny per-channel combine + BN fold (negligible XLA work) ---
    s1 = jnp.sum(part[:, 0, :], axis=0)                   # (Coutp,)
    s2 = jnp.sum(part[:, 1, :], axis=0)
    count = jnp.float32(M)                                 # padded rows contribute 0
    mean = s1 / count
    var = jnp.maximum(s2 / count - mean * mean, 0.0)       # guard cancellation
    gamma_p = jnp.pad(gamma.astype(jnp.float32), (0, Coutp - Cout))
    beta_p = jnp.pad(beta.astype(jnp.float32), (0, Coutp - Cout))
    scale = gamma_p * jax.lax.rsqrt(var + EPS)             # y = conv*scale + shift
    shift = beta_p - mean * scale

    out2d = pl.pallas_call(
        _make_bn_act_kernel(act),
        out_shape=jax.ShapeDtypeStruct((Mp, Coutp), jnp.float32),
        grid_spec=pltpu.PrefetchScalarGridSpec(
            num_scalar_prefetch=0,
            grid=(n_tiles,),
            in_specs=[pl.BlockSpec((1, Coutp), lambda m: (0, 0)),
                      pl.BlockSpec((1, Coutp), lambda m: (0, 0)),
                      pl.BlockSpec((tm, Coutp), lambda m: (m, 0))],
            out_specs=pl.BlockSpec((tm, Coutp), lambda m: (m, 0)),
        ),
        compiler_params=pltpu.CompilerParams(
            dimension_semantics=("parallel",),
            vmem_limit_bytes=32 * 1024 * 1024,
        ),
    )(scale.reshape(1, Coutp), shift.reshape(1, Coutp), conv2d)

    out = out2d[:M, :Cout].reshape(N, OH, OW, Cout)        # NHWC (channels-last)
    if out_layout == "NHWC":
        return out
    # NCHW for drop-in parity; when chaining blocks, transpose once at the model
    # boundary instead (stay channels-last end-to-end).
    return out.transpose(0, 3, 1, 2)


def _reference(x, weight, bias, gamma, beta, *, stride=2, act="relu"):
    conv = jax.lax.conv_general_dilated(
        x, weight, (stride, stride), "VALID",
        dimension_numbers=("NCHW", "OIHW", "NCHW"),
    ) + bias.reshape(1, -1, 1, 1)
    mean = conv.mean(axis=(0, 2, 3), keepdims=True)
    var = jnp.square(conv - mean).mean(axis=(0, 2, 3), keepdims=True)
    y = (conv - mean) * jax.lax.rsqrt(var + EPS)
    y = y * gamma.reshape(1, -1, 1, 1) + beta.reshape(1, -1, 1, 1)
    if act == "relu":
        y = jnp.where(y >= 0, y, NEG_SLOPE * y)
    return y


if __name__ == "__main__":
    key = jax.random.PRNGKey(0)
    k_x, k_w, k_b = jax.random.split(key, 3)

    N, Cin, H, W = 2, 4, 16, 16
    Cout, KH, KW, stride = 8, 4, 4, 2

    x = jax.random.normal(k_x, (N, Cin, H, W), dtype=jnp.float32)
    weight = 0.1 * jax.random.normal(k_w, (Cout, Cin, KH, KW), dtype=jnp.float32)
    bias = 0.1 * jax.random.normal(k_b, (Cout,), dtype=jnp.float32)
    gamma = jnp.ones((Cout,), dtype=jnp.float32)   # BatchNorm2d default weight
    beta = jnp.zeros((Cout,), dtype=jnp.float32)   # BatchNorm2d default bias

    ref = _reference(x, weight, bias, gamma, beta, stride=stride, act="relu")
    OH, OW = (H - KH) // stride + 1, (W - KW) // stride + 1

    # f32 MXU path, tm=56 forces a 2-tile grid so the streamed partial-stat
    # path and padded-row handling are exercised (M=98 -> Mp=112).
    out = down_block_forward(x, weight, bias, gamma, beta, stride=stride,
                             act="relu", tm=56, matmul_dtype=jnp.float32)
    out = jax.block_until_ready(out)
    assert out.shape == ref.shape == (N, Cout, OH, OW)
    assert jnp.allclose(out, ref, atol=1e-4, rtol=1e-4)

    # bf16 MXU path (recommended on v6e/v7x) — elementwise BN/act stays f32.
    out_bf16 = down_block_forward(x, weight, bias, gamma, beta, stride=stride,
                                  act="relu", tm=56, matmul_dtype=jnp.bfloat16)
    out_bf16 = jax.block_until_ready(out_bf16)
    assert jnp.allclose(out_bf16, ref, atol=5e-2, rtol=5e-2)

    print("KERNEL_OK")
</pallas_src>

<mosaic_0001>
module attributes {stable_mosaic.version = 11 : i64} {
  func.func @_conv_stats_kernel(%arg0: i32, %arg1: memref<56x128xf32, #tpu.memory_space<vmem>>, %arg2: memref<128x128xf32, #tpu.memory_space<vmem>>, %arg3: memref<56x128xf32, #tpu.memory_space<vmem>>, %arg4: memref<1x2x128xf32, #tpu.memory_space<vmem>>) attributes {dimension_semantics = [#tpu.dimension_semantics<parallel>], iteration_bounds = array<i64: 2>, scalar_prefetch = 0 : i64, scratch_operands = 0 : i64, tpu.core_type = #tpu.core_type<tc>, window_params = [{transform_indices = @transform_0, window_bounds = array<i64: 56, 128>}, {pipeline_mode = #tpu.pipeline_mode<synchronous>, transform_indices = @transform_1, window_bounds = array<i64: 128, 128>}, {transform_indices = @transform_2, window_bounds = array<i64: 56, 128>}, {transform_indices = @transform_3, window_bounds = array<i64: 1, 2, 128>}]} {
    %c0 = arith.constant 0 : index
    %c0_0 = arith.constant 0 : index
    %0 = vector.load %arg1[%c0, %c0_0] : memref<56x128xf32, #tpu.memory_space<vmem>>, vector<56x128xf32>
    %c0_1 = arith.constant 0 : index
    %c0_2 = arith.constant 0 : index
    %1 = vector.load %arg2[%c0_1, %c0_2] : memref<128x128xf32, #tpu.memory_space<vmem>>, vector<128x128xf32>
    %cst = arith.constant dense<0.000000e+00> : vector<56x128xf32>
    %2 = tpu.matmul %0, %1, %cst {dimension_numbers = #tpu.dot_dimension_numbers<[1], [0], [0], [1], [0, 0, 1, 1], [], []>} : vector<56x128xf32>, vector<128x128xf32>, vector<56x128xf32> -> vector<56x128xf32>
    %c0_3 = arith.constant 0 : index
    %c0_4 = arith.constant 0 : index
    %3 = vector.load %arg3[%c0_3, %c0_4] : memref<56x128xf32, #tpu.memory_space<vmem>>, vector<56x128xf32>
    tpu.vector_store %arg3[%c0_3, %c0_4], %2 {strides = array<i32>} : memref<56x128xf32, #tpu.memory_space<vmem>>, vector<56x128xf32>,
    %cst_5 = arith.constant dense<0.000000e+00> : vector<128xf32>
    %4 = vector.multi_reduction <add>, %2, %cst_5 [0] : vector<56x128xf32> to vector<128xf32>
    %5 = vector.shape_cast %4 : vector<128xf32> to vector<1x128xf32>
    %c0_6 = arith.constant 0 : index
    %c0_7 = arith.constant 0 : index
    %c0_8 = arith.constant 0 : index
    %6 = vector.load %arg4[%c0_6, %c0_7, %c0_8] : memref<1x2x128xf32, #tpu.memory_space<vmem>>, vector<1x1x128xf32>
    %7 = vector.shape_cast %6 : vector<1x1x128xf32> to vector<1x128xf32>
    %8 = vector.shape_cast %5 : vector<1x128xf32> to vector<1x1x128xf32>
    tpu.vector_store %arg4[%c0_6, %c0_7, %c0_8], %8 {strides = array<i32>} : memref<1x2x128xf32, #tpu.memory_space<vmem>>, vector<1x1x128xf32>,
    %9 = arith.mulf %2, %2 : vector<56x128xf32>
    %cst_9 = arith.constant dense<0.000000e+00> : vector<128xf32>
    %10 = vector.multi_reduction <add>, %9, %cst_9 [0] : vector<56x128xf32> to vector<128xf32>
    %11 = vector.shape_cast %10 : vector<128xf32> to vector<1x128xf32>
    %c0_10 = arith.constant 0 : index
    %c1 = arith.constant 1 : index
    %c0_11 = arith.constant 0 : index
    %12 = vector.load %arg4[%c0_10, %c1, %c0_11] : memref<1x2x128xf32, #tpu.memory_space<vmem>>, vector<1x1x128xf32>
    %13 = vector.shape_cast %12 : vector<1x1x128xf32> to vector<1x128xf32>
    %14 = vector.shape_cast %11 : vector<1x128xf32> to vector<1x1x128xf32>
    tpu.vector_store %arg4[%c0_10, %c1, %c0_11], %14 {strides = array<i32>} : memref<1x2x128xf32, #tpu.memory_space<vmem>>, vector<1x1x128xf32>,
    return
  }
  func.func @transform_0(%arg0: i32) -> (i32, i32) {
    %c0_i32 = arith.constant 0 : i32
    %c0_i32_0 = arith.constant 0 : i32
    return %arg0, %c0_i32 : i32, i32
  }
  func.func @transform_1(%arg0: i32) -> (i32, i32) {
    %c0_i32 = arith.constant 0 : i32
    %c0_i32_0 = arith.constant 0 : i32
    %c0_i32_1 = arith.constant 0 : i32
    return %c0_i32, %c0_i32_0 : i32, i32
  }
  func.func @transform_2(%arg0: i32) -> (i32, i32) {
    %c0_i32 = arith.constant 0 : i32
    %c0_i32_0 = arith.constant 0 : i32
    return %arg0, %c0_i32 : i32, i32
  }
  func.func @transform_3(%arg0: i32) -> (i32, i32, i32) {
    %c0_i32 = arith.constant 0 : i32
    %c0_i32_0 = arith.constant 0 : i32
    %c0_i32_1 = arith.constant 0 : i32
    return %arg0, %c0_i32, %c0_i32_0 : i32, i32, i32
  }
}

</mosaic_0001>

<bundles_post_ra>
// kernel: tpu_custom_call.1
= control target key start
LH: loop header
LB: loop body
LE: loop exit
PB: predicated region body
PF: predicated region fallthrough
CT: control target
= control target key end

     0   :  { %9 = vsyncpa [#allocation3], 0  ;;  %s1170_s0 = inlined_call_operand.hbm [shape: f32[112,128], index: 0, kind: input, shape index: {}]   ;;  %s1171_s1 = inlined_call_operand.hbm [shape: f32[128,128], index: 1, kind: input, shape index: {}]   ;;  %s1172_s2 = inlined_call_operand.hbm [shape: f32[112,128], index: 2, kind: output, shape index: {0}]   ;;  %s1173_s3 = inlined_call_operand.hbm [shape: f32[2,2,128], index: 3, kind: output, shape index: {1}]  }
   0x1   :  { %11 = vsyncpa [#allocation3 + $0x1], 0 }
   0x2   :  { %12 = vsyncpa [#allocation6], 0 }
   0x3   :  { %13 = vsyncpa [#allocation4], 0 }
   0x4   :  { %15 = vsyncpa [#allocation4 + $0x1], 0 }
   0x5   :  { %16 = vsyncpa [#allocation9], 0 }
   0x6   :  { %18 = vsyncpa [#allocation9 + $0x1], 0  ;;  %s904_s12 = smov 0   ;;  %s906_s13 = smov 0  }
   0x7   :  { %s908_s14 = smov 0   ;;  %s910_s15 = smov 0  }
   0x8 LB: > { %s925_s16 = sadd.s32 4294967295, %s872_s15   ;;  %s527_s17 = sadd.s32 4294967294, %s872_s15   ;;  %s872_s15 = sphi %s910_s15, %s1195_s15   ;;  %s868_s14 = sphi %s908_s14, %s1194_s14   ;;  %s864_s13 = sphi %s906_s13, %s1193_s13   ;;  %s860_s12 = sphi %s904_s12, %s1192_s12  }
   0x9   : > { %p44_p0 = scmp.ne.s32.totalorder %s864_s13, %s860_s12  ;;  %p1174_p1 = scmp.eq.s32.totalorder %s925_s16, 0 }
   0xa   : > { %p95_p3 = scmp.eq.s32.totalorder %s527_s17, 1  ;;  %p528_p5 = scmp.ge.s32.totalorder %s872_s15, 1 }
   0xb   : > { %p934_p4 = por %p1174_p1, %p44_p0  ;;  %p128_p7 = scmp.lt.s32.totalorder %s872_s15, 3 }
   0xc   : > { %p939_p6 = por %p95_p3, %p44_p0  ;;  %s874_s21 = smov [#allocation5]  }
   0xd   : > { %s1178_s18 = scalar_select %p934_p4, 1, 0 }
   0xe   : > { %s1179_s19 = scalar_select %p939_p6, 1, 0 }
   0xf   : > { %p944_p8 = pnand %p528_p5, %p128_p7  ;;  %s140_s22 = sshll.u32 %s874_s21, 4  ;;  %s141_s22 = int_to_ptr.vmem [resolvable:$true] %s140_s22 }
  0x10   : > { %s958_s24 = sadd.s32 1, %s872_s15   ;;  %s31_s25 = sadd.s32 1, %s868_s14 }
  0x11   : > { %s1180_s20 = scalar_select %p944_p8, 1, 0 }
  0x12   : > { %p662_p9 = pneg %p944_p8  ;;  %s28_s26 = ssub.s32 %s872_s15, %s958_s24 }
  0x13   : > { %s731_s27 = scalar_lea.vmem %s141_s22, 2048  ;;  %p739_p5 = scmp.lt.s32.totalorder %s141_s22, %s141_s22 }
  0x14   : > { %p953_p11 = pnand %p662_p9, %p1174_p1  ;;  %p732_p13 = scmp.ne.s32.totalorder %s141_s22, %s731_s27 }
  0x15   : > { %p740_p7 = scmp.lt.s32.totalorder %s731_s27, %s731_s27 }
  0x16   : > { %p722_p12 = pneg %p953_p11 }
  0x17   : > { %p741_p10 = por %p740_p7, %p739_p5 }
  0x18   : > { %p734_p0 = pnand %p732_p13, %p722_p12 }
  0x1a   : > { %p735_p3 = pneg %p734_p0 }
  0x1c   : > { %p742_p2 = pnand %p741_p10, %p735_p3 }
  0x1e   : > { %745 = shalt.err (!%p742_p2)
}
  0x1f   : > { %s875_s28 = smov 128   ;;  %s876_s29 = smov 8  }
  0x20   : > { %665 = dma.hbm_to_vmem [thread:$0]  (!%p953_p11), %s1171_s1, 2048, %s141_s22, [#allocation6], %s875_s28, %s875_s28, %s876_s29  }
  0x21   : > { %p29_p2 = scmp.eq.s32.totalorder %s28_s26, 0  ;;  %p38_p9 = scmp.ne.s32.totalorder %s868_s14, %s864_s13 }
  0x22   : > { %p39_p10 = scmp.eq.s32.totalorder %s872_s15, 0  ;;  %p678_p12 = scmp.lt.s32.totalorder %s872_s15, 2 }
  0x23   : > { %s978_s5 = scalar_select %p29_p2, %s868_s14, %s31_s25  }
  0x24   : > { %p40_p13 = por %p39_p10, %p38_p9  ;;  %p1182_p0 = scmp.eq.s32.totalorder %s925_s16, 1 }
  0x25   : > { %s154_s7 = sand.u32 1, %s868_s14   ;;  %s540_s8 = smul.u32 896, %s872_s15 }
  0x26   : > { %p982_p3 = por %p1182_p0, %p38_p9  ;;  %s650_s9 = smul.u32 56, %s154_s7 }
  0x27   : > { %p988_p5 = pnand %p678_p12, %p40_p13  ;;  %s995_s21 = scalar_lea.hbm %s1170_s0, %s540_s8 }
  0x28   : > { %s1183_s6 = scalar_select %p982_p3, 1, 0 }
  0x29   : > { %s158_s22 = scalar_lea.vmem [#allocation2], %s650_s9  ;;  %s999_s25 = scalar_lea.sflag [#allocation3], %s154_s7 }
  0x2a   : > { %s165_s23 = sshll.u32 %s158_s22, 4  ;;  %s746_s26 = scalar_lea.hbm %s995_s21, 896  ;;  %s997_s23 = int_to_ptr.vmem [resolvable:$true] %s165_s23 }
  0x2b   : > { %p747_p11 = scmp.ne.s32.totalorder %s995_s21, %s746_s26  ;;  %p748_p7 = pneg %p988_p5 }
  0x2c   : > { %s751_s4 = scalar_lea.hbm %s1170_s0, 1792  ;;  %p752_p10 = scmp.lt.s32.totalorder %s995_s21, %s1170_s0 }
  0x2d   : > { %p749_p2 = pnand %p748_p7, %p747_p11  ;;  %p753_p12 = scmp.lt.s32.totalorder %s751_s4, %s746_s26 }
  0x2f   : > { %p750_p9 = pneg %p749_p2  ;;  %p754_p13 = por %p753_p12, %p752_p10 }
  0x31   : > { %p755_p0 = pnand %p754_p13, %p750_p9 }
  0x33   : > { %758 = shalt.err (!%p755_p0)
}
  0x34   : > { %s759_s7 = scalar_lea.vmem %s997_s23, 896  ;;  %s877_s9 = smov [#allocation2]  }
  0x35   : > { %p760_p1 = scmp.ne.s32.totalorder %s997_s23, %s759_s7  ;;  %s764_s17 = sshll.u32 %s877_s9, 4  ;;  %s765_s17 = int_to_ptr.vmem [resolvable:$false] %s764_s17 }
  0x36   : > { %s766_s22 = scalar_lea.vmem %s765_s17, 1792  ;;  %p767_p2 = scmp.lt.s32.totalorder %s997_s23, %s765_s17 }
  0x37   : > { %p762_p6 = pnand %p760_p1, %p748_p7  ;;  %p768_p3 = scmp.lt.s32.totalorder %s766_s22, %s759_s7 }
  0x39   : > { %p763_p11 = pneg %p762_p6  ;;  %p769_p4 = por %p768_p3, %p767_p2 }
  0x3b   : > { %p770_p8 = pnand %p769_p4, %p763_p11 }
  0x3d   : > { %773 = shalt.err (!%p770_p8)
}
  0x3e   : > { %669 = dma.hbm_to_vmem [thread:$0]  (!%p988_p5), %s995_s21, 896, %s997_s23, %s999_s25, %s875_s28, %s875_s28, %s876_s29  }
  0x3f   : > { %p1185_p1 = scmp.ne.s32.totalorder %s1180_s20, 0 }
  0x40   : > { %s1026_s26 = sand.u32 (!%p1185_p1), 1, %s864_s13   ;;  %p1186_p4 = scmp.ne.s32.totalorder (!%p1185_p1), %s1178_s18, 0 }
  0x41   : > { %177 = sbr.rel (%p1185_p1) target bundleno = 359 (0x167), region = 28  ;;  %s180_s30 = scalar_lea.sflag (!%p1185_p1), [#allocation3], %s1026_s26 }
  0x42   : > { %s651_s27 = smul.u32 (!%p1185_p1), 56, %s1026_s26 }
  0x44   : > { %s1032_s10 = scalar_lea.vmem (!%p1185_p1), [#allocation2], %s651_s27 }
  0x46   : > { %843 = dma.done.wait (%p1186_p4), %s180_s30, 896  }
  0x47   : > { %845 = vsyncadd (%p1186_p4), %s180_s30, 4294966400  ;;  %p1187_p6 = scmp.eq.s32.totalorder %s925_s16, 0 }
  0x49   : > { %847 = dma.done.wait (%p1187_p6), [#allocation6], 2048   ;;  %p1188_p8 = pmov %p1187_p6 }
  0x4a   : > { %v878_v0 = vmov 0.0   ;;  %vm879_vm0 = vmmov 0   ;;  %v239_v1 = vld [vmem:[#allocation5 + $0x78] sm:$0xff]  ;;  %v238_v2 = vld [vmem:[#allocation5 + $0x70] sm:$0xff]  ;;  %v237_v3 = vld [vmem:[#allocation5 + $0x68] sm:$0xff]  ;;  %s207_s18 = scalar_lea.vmem [#allocation7], %s651_s27 }
  0x4b   : > { %849 = vsyncadd (%p1188_p8), [#allocation6], 4294965248  ;;  %565 = vmatprep.subr.mxu0 %v878_v0  ;;  %618 = vmatprep.subr.mxu1 %v878_v0  ;;  %v236_v4 = vld [vmem:[#allocation5 + $0x60] sm:$0xff]  ;;  %v235_v5 = vld [vmem:[#allocation5 + $0x58] sm:$0xff]  ;;  %s399_s20 = sshll.u32 %s207_s18, 4  ;;  %s541_s28 = smul.u32 896, %s925_s16  ;;  %s1101_s20 = int_to_ptr.vmem [resolvable:$true] %s399_s20 }
  0x4c   : > { %597 = vmatprep.mubr.msk.f32.mxu0 %vm879_vm0, %v878_v0  ;;  %609 = vmatprep.mubr.msk.f32.mxu1 %vm879_vm0, %v878_v0  ;;  %v234_v6 = vld [vmem:[#allocation5 + $0x50] sm:$0xff]  ;;  %v233_v7 = vld [vmem:[#allocation5 + $0x48] sm:$0xff]  ;;  %v232_v8 = vld [vmem:[#allocation5 + $0x40] sm:$0xff]  ;;  %s381_s25 = scalar_lea.sflag [#allocation4], %s1026_s26  ;;  %s774_s4 = scalar_lea.vmem %s1101_s20, 896 }
  0x4d   : > { %566 = vmatpush3.msra.mxu0 %v239_v1  ;;  %634 = vmatpush3.msra.mxu1 %v239_v1  ;;  %v231_v9 = vld [vmem:[#allocation5 + $0x38] sm:$0xff]  ;;  %v230_v10 = vld [vmem:[#allocation5 + $0x30] sm:$0xff]  ;;  %v229_v11 = vld [vmem:[#allocation5 + $0x28] sm:$0xff]  ;;  %s1106_s23 = scalar_lea.hbm %s1172_s2, %s541_s28  ;;  %p775_p3 = scmp.ne.s32.totalorder %s1101_s20, %s774_s4 }
  0x4e   : > { %567 = vmatprep.subr.mxu0 %v878_v0  ;;  %619 = vmatprep.subr.mxu1 %v878_v0  ;;  %v228_v12 = vld [vmem:[#allocation5 + $0x20] sm:$0xff]  ;;  %v227_v13 = vld [vmem:[#allocation5 + $0x18] sm:$0xff]  ;;  %v226_v14 = vld [vmem:[#allocation5 + $0x10] sm:$0xff]  ;;  %p1189_p5 = scmp.ne.s32.totalorder %s1183_s6, 0  ;;  %s880_s8 = smov [#allocation7]  }
  0x4f   : > { %568 = vmatpush3.msra.mxu0 %v238_v2  ;;  %635 = vmatpush3.msra.mxu1 %v238_v2  ;;  %v225_v15 = vld [vmem:[#allocation5 + $0x8] sm:$0xff]  ;;  %v224_v16 = vld [vmem:[#allocation5] sm:$0xff]  ;;  %v218_v19 = vld [vmem:[%s1032_s10 + $0x8] sm:$0xff]  ;;  %s778_s11 = sshll.u32 %s880_s8, 4  ;;  %s779_s11 = int_to_ptr.vmem [resolvable:$false] %s778_s11 }
  0x50   : > { %569 = vmatprep.subr.mxu0 %v878_v0  ;;  %620 = vmatprep.subr.mxu1 %v878_v0  ;;  %v217_v17 = vld [vmem:[%s1032_s10] sm:$0xff]  ;;  %v222_v20 = vld [vmem:[%s1032_s10 + $0x28] sm:$0xff]  ;;  %v219_v21 = vld [vmem:[%s1032_s10 + $0x10] sm:$0xff]  ;;  %p776_p7 = pnand %p775_p3, %p1189_p5  ;;  %s780_s7 = scalar_lea.vmem %s779_s11, 1792 }
  0x51   : > { %570 = vmatpush3.msra.mxu0 %v237_v3  ;;  %636 = vmatpush3.msra.mxu1 %v237_v3  ;;  %v221_v18 = vld [vmem:[%s1032_s10 + $0x20] sm:$0xff]  ;;  %v223_v22 = vld [vmem:[%s1032_s10 + $0x30] sm:$0xff]  ;;  %v220_v23 = vld [vmem:[%s1032_s10 + $0x18] sm:$0xff]  ;;  %p781_p10 = scmp.lt.s32.totalorder %s1101_s20, %s779_s11  ;;  %p782_p12 = scmp.lt.s32.totalorder %s780_s7, %s774_s4 }
  0x52   : > { %571 = vmatprep.subr.mxu0 %v878_v0  ;;  %621 = vmatprep.subr.mxu1 %v878_v0  ;;  %p777_p9 = pneg %p776_p7 }
  0x53   : > { %572 = vmatpush3.msra.mxu0 %v236_v4  ;;  %637 = vmatpush3.msra.mxu1 %v236_v4  ;;  %p783_p13 = por %p782_p12, %p781_p10 }
  0x54   : > { %573 = vmatprep.subr.mxu0 %v878_v0  ;;  %622 = vmatprep.subr.mxu1 %v878_v0 }
  0x55   : > { %574 = vmatpush3.msra.mxu0 %v235_v5  ;;  %638 = vmatpush3.msra.mxu1 %v235_v5  ;;  %p784_p0 = pnand %p783_p13, %p777_p9 }
  0x56   : > { %575 = vmatprep.subr.mxu0 %v878_v0  ;;  %623 = vmatprep.subr.mxu1 %v878_v0 }
  0x57   : > { %576 = vmatpush3.msra.mxu0 %v234_v6  ;;  %639 = vmatpush3.msra.mxu1 %v234_v6 }
  0x58   : > { %577 = vmatprep.subr.mxu0 %v878_v0  ;;  %624 = vmatprep.subr.mxu1 %v878_v0 }
  0x59   : > { %578 = vmatpush3.msra.mxu0 %v233_v7  ;;  %640 = vmatpush3.msra.mxu1 %v233_v7 }
  0x5a   : > { %579 = vmatprep.subr.mxu0 %v878_v0  ;;  %625 = vmatprep.subr.mxu1 %v878_v0 }
  0x5b   : > { %580 = vmatpush3.msra.mxu0 %v232_v8  ;;  %641 = vmatpush3.msra.mxu1 %v232_v8 }
  0x5c   : > { %581 = vmatprep.subr.mxu0 %v878_v0  ;;  %626 = vmatprep.subr.mxu1 %v878_v0 }
  0x5d   : > { %582 = vmatpush3.msra.mxu0 %v231_v9  ;;  %642 = vmatpush3.msra.mxu1 %v231_v9 }
  0x5e   : > { %583 = vmatprep.subr.mxu0 %v878_v0  ;;  %627 = vmatprep.subr.mxu1 %v878_v0 }
  0x5f   : > { %584 = vmatpush3.msra.mxu0 %v230_v10  ;;  %643 = vmatpush3.msra.mxu1 %v230_v10 }
  0x60   : > { %585 = vmatprep.subr.mxu0 %v878_v0  ;;  %628 = vmatprep.subr.mxu1 %v878_v0 }
  0x61   : > { %586 = vmatpush3.msra.mxu0 %v229_v11  ;;  %644 = vmatpush3.msra.mxu1 %v229_v11 }
  0x62   : > { %587 = vmatprep.subr.mxu0 %v878_v0  ;;  %629 = vmatprep.subr.mxu1 %v878_v0 }
  0x63   : > { %588 = vmatpush3.msra.mxu0 %v228_v12  ;;  %645 = vmatpush3.msra.mxu1 %v228_v12 }
  0x64   : > { %589 = vmatprep.subr.mxu0 %v878_v0  ;;  %630 = vmatprep.subr.mxu1 %v878_v0 }
  0x65   : > { %590 = vmatpush3.msra.mxu0 %v227_v13  ;;  %646 = vmatpush3.msra.mxu1 %v227_v13 }
  0x66   : > { %591 = vmatprep.subr.mxu0 %v878_v0  ;;  %631 = vmatprep.subr.mxu1 %v878_v0 }
  0x67   : > { %592 = vmatpush3.msra.mxu0 %v226_v14  ;;  %647 = vmatpush3.msra.mxu1 %v226_v14 }
  0x68   : > { %593 = vmatprep.subr.mxu0 %v878_v0  ;;  %632 = vmatprep.subr.mxu1 %v878_v0 }
  0x69   : > { %594 = vmatpush3.msra.mxu0 %v225_v15  ;;  %648 = vmatpush3.msra.mxu1 %v225_v15 }
  0x6a   : > { %595 = vmatprep.subr.mxu0 %v878_v0  ;;  %633 = vmatprep.subr.mxu1 %v878_v0 }
  0x6b   : > { %596 = vmatpush3.msra.mxu0 %v224_v16  ;;  %649 = vmatpush3.msra.mxu1 %v224_v16 }
  0x6c   : > { %598 = vmatmul.mubr.f32.vlgmr.msra.gmra.mxu0 %v217_v17  ;;  %610 = vmatmul.mubr.f32.vlgmr.msra.gmra.mxu1 %v221_v18 }
  0x6d   : > { %600 = vmatprep.mubr.msk.f32.mxu0 %vm879_vm0, %v878_v0  ;;  %612 = vmatprep.mubr.msk.f32.mxu1 %vm879_vm0, %v878_v0 }
  0x70   : > { %601 = vmatmul.mubr.f32.gmra.mxu0 %v218_v19  ;;  %613 = vmatmul.mubr.f32.gmra.mxu1 %v222_v20 }
  0x71   : > { %603 = vmatprep.mubr.msk.f32.mxu0 %vm879_vm0, %v878_v0  ;;  %615 = vmatprep.mubr.msk.f32.mxu1 %vm879_vm0, %v878_v0 }
  0x74   : > { %604 = vmatmul.mubr.f32.gmra.mxu0 %v219_v21  ;;  %616 = vmatmul.mubr.f32.gmra.mxu1 %v223_v22 }
  0x75   : > { %606 = vmatprep.mubr.msk.f32.mxu0 %vm879_vm0, %v878_v0 }
  0x78   : > { %607 = vmatmul.mubr.f32.gmra.mxu0 %v220_v23 }
 0x12c   : > { %v306_v24 = vpop.f32.mrf.mxu0  ;;  %v1095_v25 = vpop.f32.mrf.mxu1 }
 0x12d   : > { %340 = vst [vmem:[%s207_s18] sm:$0xff] %v306_v24  ;;  %344 = vst [vmem:[%s207_s18 + $0x20] sm:$0xff] %v1095_v25  ;;  %v360_v35 = vmul.f32 %v306_v24, %v306_v24 }
 0x12e   : > { %v599_v26 = vpop.f32.mrf.mxu0  ;;  %v611_v27 = vpop.f32.mrf.mxu1 }
 0x130   : > { %v311_v28 = vpop.f32.mrf.mxu0  ;;  %v331_v29 = vpop.f32.mrf.mxu1 }
 0x131   : > { %341 = vst [vmem:[%s207_s18 + $0x8] sm:$0xff] %v311_v28  ;;  %345 = vst [vmem:[%s207_s18 + $0x28] sm:$0xff] %v331_v29  ;;  %v361_v32 = vmul.f32 %v311_v28, %v311_v28  ;;  %v347_v36 = vadd.f32 %v311_v28, %v306_v24 }
 0x132   : > { %v602_v30 = vpop.f32.mrf.mxu0  ;;  %v614_v31 = vpop.f32.mrf.mxu1 }
 0x133   : > { %v367_v40 = vadd.f32 %v361_v32, %v360_v35 }
 0x134   : > { %v316_v33 = vpop.f32.mrf.mxu0  ;;  %v336_v34 = vpop.f32.mrf.mxu1 }
 0x135   : > { %342 = vst [vmem:[%s207_s18 + $0x10] sm:$0xff] %v316_v33  ;;  %v362_v37 = vmul.f32 %v316_v33, %v316_v33  ;;  %346 = vst [vmem:[%s207_s18 + $0x30] sm:$0xff] %v336_v34  ;;  %v348_v41 = vadd.f32 %v347_v36, %v316_v33 }
 0x136   : > { %v605_v38 = vpop.f32.mrf.mxu0  ;;  %v617_v39 = vpop.f32.mrf.mxu1 }
 0x137   : > { %v368_v43 = vadd.f32 %v367_v40, %v362_v37 }
 0x138   : > { %v321_v42 = vpop.f32.mrf.mxu0 }
 0x139   : > { %343 = vst [vmem:[%s207_s18 + $0x18] sm:$0xff] %v321_v42  ;;  %v349_v44 = vadd.f32 %v348_v41, %v321_v42  ;;  %v363_v45 = vmul.f32 %v321_v42, %v321_v42 }
 0x13a   : > { %v608_v46 = vpop.f32.mrf.mxu0 }
 0x13b   : > { %787 = shalt.err (!%p784_p0)
}
 0x13c   : > { %s788_s9 = scalar_lea.hbm %s1106_s23, 896  ;;  %s792_s27 = scalar_lea.hbm %s1172_s2, 1792 }
 0x13d   : > { %p789_p11 = scmp.ne.s32.totalorder %s1106_s23, %s788_s9  ;;  %p793_p4 = scmp.lt.s32.totalorder %s1106_s23, %s1172_s2 }
 0x13e   : > { %p794_p6 = scmp.lt.s32.totalorder %s792_s27, %s788_s9 }
 0x13f   : > { %p790_p2 = pnand %p789_p11, %p1189_p5 }
 0x140   : > { %p795_p8 = por %p794_p6, %p793_p4 }
 0x141   : > { %p791_p1 = pneg %p790_p2 }
 0x143   : > { %p796_p3 = pnand %p795_p8, %p791_p1 }
 0x145   : > { %799 = shalt.err (!%p796_p3)
}
 0x146   : > { %s881_s18 = smov 128   ;;  %s882_s28 = smov 8   ;;  %v364_v47 = vmul.f32 %v1095_v25, %v1095_v25  ;;  %v369_v48 = vadd.f32 %v368_v43, %v363_v45  ;;  %v350_v49 = vadd.f32 %v349_v44, %v1095_v25  ;;  %v365_v51 = vmul.f32 %v331_v29, %v331_v29 }
 0x147   : > { %658 = dma.vmem_to_hbm [thread:$0]  (%p1189_p5), %s1101_s20, 896, %s1106_s23, %s381_s25, %s881_s18, %s881_s18, %s882_s28   ;;  %v366_v53 = vmul.f32 %v336_v34, %v336_v34 }
 0x148   : > { %v351_v50 = vadd.f32 %v350_v49, %v331_v29  ;;  %v370_v52 = vadd.f32 %v369_v48, %v364_v47  ;;  %s534_s29 = sshll.u32 %s1026_s26, 1  ;;  %s537_s20 = sshll.u32 %s925_s16, 5 }
 0x149   : > { %s214_s21 = scalar_lea.vmem [#allocation8], %s534_s29  ;;  %s413_s8 = scalar_lea.hbm %s1173_s3, %s537_s20 }
 0x14a   : > { %v371_v54 = vadd.f32 %v370_v52, %v365_v51  ;;  %v352_v55 = vadd.f32 %v351_v50, %v336_v34  ;;  %s415_s23 = sshll.u32 %s214_s21, 4  ;;  %s386_s11 = scalar_lea.sflag [#allocation9], %s1026_s26  ;;  %s416_s23 = int_to_ptr.vmem [resolvable:$true] %s415_s23 }
 0x14b   : > { %s800_s7 = scalar_lea.vmem %s416_s23, 32  ;;  %s883_s9 = smov [#allocation8]  }
 0x14c   : > { %v353_v56 = vrot.slane %v352_v55, 4  ;;  %v372_v57 = vadd.f32 %v371_v54, %v366_v53  ;;  %p801_p7 = scmp.ne.s32.totalorder %s416_s23, %s800_s7  ;;  %s804_s16 = sshll.u32 %s883_s9, 4  ;;  %s805_s16 = int_to_ptr.vmem [resolvable:$false] %s804_s16 }
 0x14d   : > { %s806_s17 = scalar_lea.vmem %s805_s16, 64  ;;  %p807_p12 = scmp.lt.s32.totalorder %s416_s23, %s805_s16 }
 0x14e   : > { %v354_v58 = vadd.f32 %v353_v56, %v352_v55  ;;  %v373_v59 = vrot.slane %v372_v57, 4  ;;  %p802_p9 = pnand %p801_p7, %p1189_p5  ;;  %p808_p13 = scmp.lt.s32.totalorder %s806_s17, %s800_s7 }
 0x150   : > { %v355_v60 = vrot.slane %v354_v58, 2  ;;  %v374_v61 = vadd.f32 %v373_v59, %v372_v57  ;;  %p803_p10 = pneg %p802_p9  ;;  %p809_p0 = por %p808_p13, %p807_p12 }
 0x152   : > { %v356_v62 = vadd.f32 %v355_v60, %v354_v58  ;;  %v375_v63 = vrot.slane %v374_v61, 2  ;;  %p810_p11 = pnand %p809_p0, %p803_p10 }
 0x154   : > { %v357_v0 = vrot.slane %v356_v62, 1  ;;  %v376_v1 = vadd.f32 %v375_v63, %v374_v61 }
 0x156   : > { %v358_v2 = vadd.f32 %v357_v0, %v356_v62  ;;  %v377_v3 = vrot.slane %v376_v1, 1 }
 0x158   : > { %v378_v4 = vadd.f32 %v377_v3, %v376_v1  ;;  %359 = vst [vmem:[%s214_s21] sm:$0x1] %v358_v2 }
 0x15a   : > { %379 = vst [vmem:[%s214_s21 + $0x1] sm:$0x1] %v378_v4 }
 0x15b   : > { %813 = shalt.err (!%p810_p11)
}
 0x15c   : > { %s814_s22 = scalar_lea.hbm %s413_s8, 32  ;;  %s818_s30 = scalar_lea.hbm %s1173_s3, 64 }
 0x15d   : > { %p815_p2 = scmp.ne.s32.totalorder %s413_s8, %s814_s22  ;;  %p819_p6 = scmp.lt.s32.totalorder %s413_s8, %s1173_s3 }
 0x15e   : > { %p820_p8 = scmp.lt.s32.totalorder %s818_s30, %s814_s22 }
 0x15f   : > { %p816_p1 = pnand %p815_p2, %p1189_p5 }
 0x160   : > { %p821_p3 = por %p820_p8, %p819_p6 }
 0x161   : > { %p817_p4 = pneg %p816_p1 }
 0x163   : > { %p822_p7 = pnand %p821_p3, %p817_p4 }
 0x165   : > { %825 = shalt.err (!%p822_p7)
}
 0x166   : > { %659 = dma.vmem_to_hbm [thread:$0]  (%p1189_p5), %s416_s23, 32, %s413_s8, %s386_s11  }
 0x167 PF: > { %s427_s28 = sand.u32 1, %s860_s12   ;;  %p1190_p9 = scmp.ne.s32.totalorder %s1179_s19, 0 }
 0x168   : > { %p1191_p10 = scmp.ge.s32.totalorder %s872_s15, 2  ;;  %s428_s29 = scalar_lea.sflag [#allocation4], %s427_s28 }
 0x16a   : > { %p671_p12 = pnand %p1191_p10, %p1190_p9 }
 0x16c   : > { %p672_p13 = pneg %p671_p12 }
 0x16e   : > { %851 = dma.done.wait (%p672_p13), %s428_s29, 896  }
 0x16f   : > { %853 = vsyncadd (%p672_p13), %s428_s29, 4294966400  ;;  %s437_s20 = scalar_lea.sflag [#allocation9], %s427_s28 }
 0x170   : > { %855 = dma.done.wait (%p672_p13), %s437_s20, 32  }
 0x171   : > { %857 = vsyncadd (%p672_p13), %s437_s20, 4294967264  ;;  %p21_p5 = scmp.ge.s32.totalorder %s958_s24, 4   ;;  %s1192_s12 = smov %s864_s13 }
 0x172   : > { %s1193_s13 = smov %s868_s14  ;;  %s1194_s14 = smov %s978_s5 }
 0x173   : > { %s1195_s15 = smov %s958_s24  ;;  %23 = sbr.rel (!%p21_p5) target bundleno = 8 (0x8), region = 94 }
 0x178   :  { %442 = vsyncpa [#allocation3], 1 }
 0x179   :  { %444 = vsyncpa [#allocation3 + $0x1], 1 }
 0x17a   :  { %445 = vsyncpa [#allocation6], 1 }
 0x17b   :  { %446 = vsyncpa [#allocation4], 1 }
 0x17c   :  { %448 = vsyncpa [#allocation4 + $0x1], 1 }
 0x17d   :  { %449 = vsyncpa [#allocation9], 1 }
 0x17e   :  { %451 = vsyncpa [#allocation9 + $0x1], 1 }

</bundles_post_ra>
